<compile_context>
chip_gen: v6e
topology: v6e:2x2x1
jax: 0.10.0
libtpu: 0.0.40
codegen_flags: <defaults>
</compile_context>

<pallas_src>
import jax
import jax.numpy as jnp
from jax.experimental import pallas as pl
from jax.experimental.pallas import tpu as pltpu


def qwen_block_kernel(hs_ref, cos_ref, sin_ref, mask_ref, past_k_ref, past_v_ref,
                      ln1_ref, ln2_ref, wqkv_ref, bqkv_ref, wo_ref, wgu_ref, wd_ref,
                      out_ref, pk_ref, pv_ref):
    _, S, HID = hs_ref.shape
    _, KVH, P, D = past_k_ref.shape
    T = pk_ref.shape[2]
    H = HID // D
    n_rep = H // KVH
    NQ, NKV = H * D, KVH * D
    INTER = wgu_ref.shape[1] // 2
    scale = 1.0 / (D ** 0.5)
    eps = 1e-6

    x = hs_ref[0]            # (S, HID)
    cos = cos_ref[0]         # (S, D)
    sin = sin_ref[0]         # (S, D)
    mask = mask_ref[0, 0]    # (S, T) additive mask

    # ---- input RMSNorm ----
    var = jnp.mean(x * x, axis=-1, keepdims=True)
    xn = x * jax.lax.rsqrt(var + eps) * ln1_ref[...]

    # ---- fused QKV projection (single MXU matmul + bias) ----
    qkv = jnp.dot(xn, wqkv_ref[...], preferred_element_type=jnp.float32) + bqkv_ref[...]
    q2d = qkv[:, :NQ]                 # (S, H*D)
    k2d = qkv[:, NQ:NQ + NKV]         # (S, KVH*D)
    v2d = qkv[:, NQ + NKV:]           # (S, KVH*D)

    def rotate_half(t):               # (..., D)
        return jnp.concatenate([-t[..., D // 2:], t[..., :D // 2]], axis=-1)

    # stack heads -> batched (head-major) layout for batched MXU einsums
    q_heads = jnp.stack([q2d[:, h * D:(h + 1) * D] for h in range(H)], axis=0)   # (H,S,D)
    k_new = jnp.stack([k2d[:, g * D:(g + 1) * D] for g in range(KVH)], axis=0)   # (KVH,S,D)
    v_new = jnp.stack([v2d[:, g * D:(g + 1) * D] for g in range(KVH)], axis=0)   # (KVH,S,D)

    # RoPE (1/sqrt(D) folded into Q once)
    q_heads = (q_heads * cos[None] + rotate_half(q_heads) * sin[None]) * scale
    k_new = k_new * cos[None] + rotate_half(k_new) * sin[None]

    # present cache = past ++ new ; single store per batch, no output read-back
    k_full = jnp.concatenate([past_k_ref[0], k_new], axis=1)   # (KVH, T, D)
    v_full = jnp.concatenate([past_v_ref[0], v_new], axis=1)   # (KVH, T, D)
    pk_ref[0] = k_full
    pv_ref[0] = v_full

    # GQA: expand KV groups across their n_rep query heads
    k_rep = jnp.stack([k_full[h // n_rep] for h in range(H)], axis=0)   # (H, T, D)
    v_rep = jnp.stack([v_full[h // n_rep] for h in range(H)], axis=0)   # (H, T, D)

    # batched attention over all heads at once
    scores = jnp.einsum('hsd,htd->hst', q_heads, k_rep,
                        preferred_element_type=jnp.float32) + mask[None]
    scores = scores - jnp.max(scores, axis=-1, keepdims=True)
    p = jnp.exp(scores)
    denom = jnp.sum(p, axis=-1, keepdims=True)
    o = jnp.einsum('hst,htd->hsd', p, v_rep,
                   preferred_element_type=jnp.float32) * pl.reciprocal(denom, approx=True)

    # single o_proj matmul on the (S, HID) head-concatenated output
    o_flat = jnp.concatenate([o[h] for h in range(H)], axis=1)          # (S, HID)
    attn = jnp.dot(o_flat, wo_ref[...], preferred_element_type=jnp.float32)
    h1 = x + attn

    # ---- post-attention RMSNorm + fused SwiGLU MLP ----
    var2 = jnp.mean(h1 * h1, axis=-1, keepdims=True)
    h1n = h1 * jax.lax.rsqrt(var2 + eps) * ln2_ref[...]
    gu = jnp.dot(h1n, wgu_ref[...], preferred_element_type=jnp.float32)  # (S, 2*INTER)
    gate = gu[:, :INTER]
    up = gu[:, INTER:]
    act = gate * jax.nn.sigmoid(gate) * up
    mlp = jnp.dot(act, wd_ref[...], preferred_element_type=jnp.float32)

    out_ref[0] = h1 + mlp


@jax.jit
def qwen_block_cache(hs, cos, sin, mask, past_k, past_v, ln1, ln2,
                     wq, bq, wk, bk, wv, bv, wo, wg, wu, wd):
    B, S, HID = hs.shape
    _, KVH, P, D = past_k.shape
    T = P + S

    # host-side weight fusion (would be pre-concatenated offline in deployment)
    wqkv = jnp.concatenate([wq, wk, wv], axis=1)
    bqkv = jnp.concatenate([bq, bk, bv], axis=1)
    wgu = jnp.concatenate([wg, wu], axis=1)

    def batch_spec(shape):
        nd = len(shape)
        return pl.BlockSpec((1,) + tuple(shape[1:]),
                            lambda b, nd=nd: (b,) + (0,) * (nd - 1))

    def shared_spec(shape):
        nd = len(shape)
        return pl.BlockSpec(tuple(shape), lambda b, nd=nd: (0,) * nd)

    in_specs = [
        batch_spec(hs.shape),
        batch_spec(cos.shape),
        batch_spec(sin.shape),
        batch_spec(mask.shape),
        batch_spec(past_k.shape),
        batch_spec(past_v.shape),
        shared_spec(ln1.shape),
        shared_spec(ln2.shape),
        shared_spec(wqkv.shape),
        shared_spec(bqkv.shape),
        shared_spec(wo.shape),
        shared_spec(wgu.shape),
        shared_spec(wd.shape),
    ]
    out_specs = (
        batch_spec((B, S, HID)),
        batch_spec((B, KVH, T, D)),
        batch_spec((B, KVH, T, D)),
    )

    return pl.pallas_call(
        qwen_block_kernel,
        grid=(B,),
        out_shape=(
            jax.ShapeDtypeStruct((B, S, HID), jnp.float32),
            jax.ShapeDtypeStruct((B, KVH, T, D), jnp.float32),
            jax.ShapeDtypeStruct((B, KVH, T, D), jnp.float32),
        ),
        in_specs=in_specs,
        out_specs=out_specs,
        compiler_params=pltpu.CompilerParams(
            dimension_semantics=("parallel",)),
    )(hs, cos, sin, mask, past_k, past_v, ln1, ln2, wqkv, bqkv, wo, wgu, wd)


# ---------------- pure-JAX reference (same math, batched) ----------------
def reference(hs, cos, sin, mask, past_k, past_v, ln1, ln2,
              wq, bq, wk, bk, wv, bv, wo, wg, wu, wd):
    B, S, HID = hs.shape
    _, KVH, P, D = past_k.shape
    H = HID // D
    n_rep = H // KVH
    eps = 1e-6

    def rms(x, w):
        var = jnp.mean(x * x, axis=-1, keepdims=True)
        return x * jax.lax.rsqrt(var + eps) * w.reshape(-1)

    xn = rms(hs, ln1)
    q = (xn @ wq + bq.reshape(-1)).reshape(B, S, H, D).transpose(0, 2, 1, 3)
    k = (xn @ wk + bk.reshape(-1)).reshape(B, S, KVH, D).transpose(0, 2, 1, 3)
    v = (xn @ wv + bv.reshape(-1)).reshape(B, S, KVH, D).transpose(0, 2, 1, 3)

    def rope(x):
        c, s = cos[:, None], sin[:, None]
        x1, x2 = x[..., :D // 2], x[..., D // 2:]
        return jnp.concatenate(
            [x1 * c[..., :D // 2] - x2 * s[..., :D // 2],
             x2 * c[..., D // 2:] + x1 * s[..., D // 2:]], axis=-1)

    q, k = rope(q), rope(k)
    pk = jnp.concatenate([past_k, k], axis=2)
    pv = jnp.concatenate([past_v, v], axis=2)
    kr = jnp.repeat(pk, n_rep, axis=1)
    vr = jnp.repeat(pv, n_rep, axis=1)
    scores = jnp.einsum('bhsd,bhtd->bhst', q, kr) / (D ** 0.5) + mask
    probs = jax.nn.softmax(scores, axis=-1)
    o = jnp.einsum('bhst,bhtd->bhsd', probs, vr).transpose(0, 2, 1, 3).reshape(B, S, HID)
    h1 = hs + o @ wo
    h1n = rms(h1, ln2)
    mlp = (jax.nn.silu(h1n @ wg) * (h1n @ wu)) @ wd
    return h1 + mlp, pk, pv


if __name__ == "__main__":
    B, S, P, HID, H, KVH, D, INTER = 2, 4, 8, 32, 4, 2, 8, 64
    T = P + S

    key = jax.random.PRNGKey(0)
    keys = jax.random.split(key, 16)

    def init(k, shape, scale=0.05):
        return jax.random.normal(k, shape, jnp.float32) * scale

    hidden_states = init(keys[0], (B, S, HID), 1.0)
    past_k = init(keys[1], (B, KVH, P, D), 1.0)
    past_v = init(keys[2], (B, KVH, P, D), 1.0)
    position_ids = jnp.broadcast_to(P + jnp.arange(S, dtype=jnp.int32), (B, S))

    # additive attention mask: all past tokens visible, causal over new tokens
    q_idx = jnp.arange(S)[:, None]
    k_idx = jnp.arange(T)[None, :]
    mask2d = jnp.where(k_idx <= (q_idx + P), 0.0, -1e9).astype(jnp.float32)
    attention_mask = jnp.broadcast_to(mask2d[None, None], (B, 1, S, T))

    # rotary cos/sin tables (Qwen1.5 rope_theta = 1e6) — JAX glue from position_ids
    base = 1e6
    inv_freq = 1.0 / (base ** (jnp.arange(0, D, 2, dtype=jnp.float32) / D))
    freqs = position_ids.astype(jnp.float32)[..., None] * inv_freq[None, None, :]
    emb = jnp.concatenate([freqs, freqs], axis=-1)          # (B, S, D)
    cos, sin = jnp.cos(emb), jnp.sin(emb)

    # parameters (torch Linear (out,in) stored pre-transposed as (in,out))
    wq = init(keys[3], (HID, H * D));       bq = init(keys[4], (1, H * D))
    wk = init(keys[5], (HID, KVH * D));     bk = init(keys[6], (1, KVH * D))
    wv = init(keys[7], (HID, KVH * D));     bv = init(keys[8], (1, KVH * D))
    wo = init(keys[9], (H * D, HID))
    wg = init(keys[10], (HID, INTER))
    wu = init(keys[11], (HID, INTER))
    wd = init(keys[12], (INTER, HID))
    ln1 = 1.0 + init(keys[13], (1, HID), 0.1)
    ln2 = 1.0 + init(keys[14], (1, HID), 0.1)

    args = (hidden_states, cos, sin, attention_mask, past_k, past_v, ln1, ln2,
            wq, bq, wk, bk, wv, bv, wo, wg, wu, wd)

    out, present_k, present_v = qwen_block_cache(*args)
    jax.block_until_ready((out, present_k, present_v))

    ref_out, ref_pk, ref_pv = reference(*args)
    # tolerance slightly loosened vs pure-f32 because the softmax denominator uses
    # the EUP approximate reciprocal (pl.reciprocal(approx=True))
    assert jnp.allclose(out, ref_out, atol=2e-3, rtol=2e-3), "hidden_states mismatch"
    assert jnp.allclose(present_k, ref_pk, atol=2e-3, rtol=2e-3), "present_k mismatch"
    assert jnp.allclose(present_v, ref_pv, atol=2e-3, rtol=2e-3), "present_v mismatch"

    print("KERNEL_OK")
</pallas_src>

<mosaic_0001>
module attributes {stable_mosaic.version = 11 : i64} {
  func.func @qwen_block_kernel(%arg0: i32, %arg1: memref<1x4x32xf32, #tpu.memory_space<vmem>>, %arg2: memref<1x4x8xf32, #tpu.memory_space<vmem>>, %arg3: memref<1x4x8xf32, #tpu.memory_space<vmem>>, %arg4: memref<1x1x4x12xf32, #tpu.memory_space<vmem>>, %arg5: memref<1x2x8x8xf32, #tpu.memory_space<vmem>>, %arg6: memref<1x2x8x8xf32, #tpu.memory_space<vmem>>, %arg7: memref<1x32xf32, #tpu.memory_space<vmem>>, %arg8: memref<1x32xf32, #tpu.memory_space<vmem>>, %arg9: memref<32x64xf32, #tpu.memory_space<vmem>>, %arg10: memref<1x64xf32, #tpu.memory_space<vmem>>, %arg11: memref<32x32xf32, #tpu.memory_space<vmem>>, %arg12: memref<32x128xf32, #tpu.memory_space<vmem>>, %arg13: memref<64x32xf32, #tpu.memory_space<vmem>>, %arg14: memref<1x4x32xf32, #tpu.memory_space<vmem>>, %arg15: memref<1x2x12x8xf32, #tpu.memory_space<vmem>>, %arg16: memref<1x2x12x8xf32, #tpu.memory_space<vmem>>) attributes {dimension_semantics = [#tpu.dimension_semantics<parallel>], iteration_bounds = array<i64: 2>, scalar_prefetch = 0 : i64, scratch_operands = 0 : i64, tpu.core_type = #tpu.core_type<tc>, window_params = [{transform_indices = @transform_0, window_bounds = array<i64: 1, 4, 32>}, {transform_indices = @transform_1, window_bounds = array<i64: 1, 4, 8>}, {transform_indices = @transform_2, window_bounds = array<i64: 1, 4, 8>}, {transform_indices = @transform_3, window_bounds = array<i64: 1, 1, 4, 12>}, {transform_indices = @transform_4, window_bounds = array<i64: 1, 2, 8, 8>}, {transform_indices = @transform_5, window_bounds = array<i64: 1, 2, 8, 8>}, {pipeline_mode = #tpu.pipeline_mode<synchronous>, transform_indices = @transform_6, window_bounds = array<i64: 1, 32>}, {pipeline_mode = #tpu.pipeline_mode<synchronous>, transform_indices = @transform_7, window_bounds = array<i64: 1, 32>}, {pipeline_mode = #tpu.pipeline_mode<synchronous>, transform_indices = @transform_8, window_bounds = array<i64: 32, 64>}, {pipeline_mode = #tpu.pipeline_mode<synchronous>, transform_indices = @transform_9, window_bounds = array<i64: 1, 64>}, {pipeline_mode = #tpu.pipeline_mode<synchronous>, transform_indices = @transform_10, window_bounds = array<i64: 32, 32>}, {pipeline_mode = #tpu.pipeline_mode<synchronous>, transform_indices = @transform_11, window_bounds = array<i64: 32, 128>}, {pipeline_mode = #tpu.pipeline_mode<synchronous>, transform_indices = @transform_12, window_bounds = array<i64: 64, 32>}, {transform_indices = @transform_13, window_bounds = array<i64: 1, 4, 32>}, {transform_indices = @transform_14, window_bounds = array<i64: 1, 2, 12, 8>}, {transform_indices = @transform_15, window_bounds = array<i64: 1, 2, 12, 8>}]} {
    %c0 = arith.constant 0 : index
    %c0_0 = arith.constant 0 : index
    %c0_1 = arith.constant 0 : index
    %0 = vector.load %arg1[%c0, %c0_0, %c0_1] : memref<1x4x32xf32, #tpu.memory_space<vmem>>, vector<1x4x32xf32>
    %1 = vector.shape_cast %0 : vector<1x4x32xf32> to vector<4x32xf32>
    %c0_2 = arith.constant 0 : index
    %c0_3 = arith.constant 0 : index
    %c0_4 = arith.constant 0 : index
    %2 = vector.load %arg2[%c0_2, %c0_3, %c0_4] : memref<1x4x8xf32, #tpu.memory_space<vmem>>, vector<1x4x8xf32>
    %3 = vector.shape_cast %2 : vector<1x4x8xf32> to vector<4x8xf32>
    %c0_5 = arith.constant 0 : index
    %c0_6 = arith.constant 0 : index
    %c0_7 = arith.constant 0 : index
    %4 = vector.load %arg3[%c0_5, %c0_6, %c0_7] : memref<1x4x8xf32, #tpu.memory_space<vmem>>, vector<1x4x8xf32>
    %5 = vector.shape_cast %4 : vector<1x4x8xf32> to vector<4x8xf32>
    %c0_8 = arith.constant 0 : index
    %c0_9 = arith.constant 0 : index
    %c0_10 = arith.constant 0 : index
    %c0_11 = arith.constant 0 : index
    %6 = vector.load %arg4[%c0_8, %c0_9, %c0_10, %c0_11] : memref<1x1x4x12xf32, #tpu.memory_space<vmem>>, vector<1x1x4x12xf32>
    %7 = vector.shape_cast %6 : vector<1x1x4x12xf32> to vector<4x12xf32>
    %8 = arith.mulf %1, %1 : vector<4x32xf32>
    %cst = arith.constant dense<0.000000e+00> : vector<4xf32>
    %9 = vector.multi_reduction <add>, %8, %cst [1] : vector<4x32xf32> to vector<4xf32>
    %10 = vector.shape_cast %9 : vector<4xf32> to vector<4x1xf32>
    %cst_12 = arith.constant 3.200000e+01 : f32
    %11 = vector.broadcast %cst_12 : f32 to vector<4x1xf32>
    %12 = arith.divf %10, %11 : vector<4x1xf32>
    %cst_13 = arith.constant 9.99999997E-7 : f32
    %13 = vector.broadcast %cst_13 : f32 to vector<4x1xf32>
    %14 = arith.addf %12, %13 : vector<4x1xf32>
    %15 = math.rsqrt %14 : vector<4x1xf32>
    %16 = vector.broadcast %15 : vector<4x1xf32> to vector<4x32xf32>
    %17 = arith.mulf %1, %16 : vector<4x32xf32>
    %c0_14 = arith.constant 0 : index
    %c0_15 = arith.constant 0 : index
    %18 = vector.load %arg7[%c0_14, %c0_15] : memref<1x32xf32, #tpu.memory_space<vmem>>, vector<1x32xf32>
    %19 = vector.broadcast %18 : vector<1x32xf32> to vector<4x32xf32>
    %20 = arith.mulf %17, %19 : vector<4x32xf32>
    %c0_16 = arith.constant 0 : index
    %c0_17 = arith.constant 0 : index
    %21 = vector.load %arg9[%c0_16, %c0_17] : memref<32x64xf32, #tpu.memory_space<vmem>>, vector<32x64xf32>
    %cst_18 = arith.constant dense<0.000000e+00> : vector<4x64xf32>
    %22 = tpu.matmul %20, %21, %cst_18 {dimension_numbers = #tpu.dot_dimension_numbers<[1], [0], [0], [1], [0, 0, 1, 1], [], []>} : vector<4x32xf32>, vector<32x64xf32>, vector<4x64xf32> -> vector<4x64xf32>
    %c0_19 = arith.constant 0 : index
    %c0_20 = arith.constant 0 : index
    %23 = vector.load %arg10[%c0_19, %c0_20] : memref<1x64xf32, #tpu.memory_space<vmem>>, vector<1x64xf32>
    %24 = vector.broadcast %23 : vector<1x64xf32> to vector<4x64xf32>
    %25 = arith.addf %22, %24 : vector<4x64xf32>
    %26 = vector.extract_strided_slice %25 {offsets = [0, 0], sizes = [4, 32], strides = [1, 1]} : vector<4x64xf32> to vector<4x32xf32>
    %27 = vector.extract_strided_slice %25 {offsets = [0, 32], sizes = [4, 16], strides = [1, 1]} : vector<4x64xf32> to vector<4x16xf32>
    %28 = vector.extract_strided_slice %25 {offsets = [0, 48], sizes = [4, 16], strides = [1, 1]} : vector<4x64xf32> to vector<4x16xf32>
    %29 = vector.extract_strided_slice %26 {offsets = [0, 0], sizes = [4, 8], strides = [1, 1]} : vector<4x32xf32> to vector<4x8xf32>
    %30 = vector.extract_strided_slice %26 {offsets = [0, 8], sizes = [4, 8], strides = [1, 1]} : vector<4x32xf32> to vector<4x8xf32>
    %31 = vector.extract_strided_slice %26 {offsets = [0, 16], sizes = [4, 8], strides = [1, 1]} : vector<4x32xf32> to vector<4x8xf32>
    %32 = vector.extract_strided_slice %26 {offsets = [0, 24], sizes = [4, 8], strides = [1, 1]} : vector<4x32xf32> to vector<4x8xf32>
    %33 = vector.shape_cast %29 : vector<4x8xf32> to vector<1x4x8xf32>
    %34 = vector.shape_cast %30 : vector<4x8xf32> to vector<1x4x8xf32>
    %35 = vector.shape_cast %31 : vector<4x8xf32> to vector<1x4x8xf32>
    %36 = vector.shape_cast %32 : vector<4x8xf32> to vector<1x4x8xf32>
    %37 = tpu.concatenate %33, %34, %35, %36 in 0 : vector<1x4x8xf32>, vector<1x4x8xf32>, vector<1x4x8xf32>, vector<1x4x8xf32> -> vector<4x4x8xf32>
    %38 = vector.extract_strided_slice %27 {offsets = [0, 0], sizes = [4, 8], strides = [1, 1]} : vector<4x16xf32> to vector<4x8xf32>
    %39 = vector.extract_strided_slice %27 {offsets = [0, 8], sizes = [4, 8], strides = [1, 1]} : vector<4x16xf32> to vector<4x8xf32>
    %40 = vector.shape_cast %38 : vector<4x8xf32> to vector<1x4x8xf32>
    %41 = vector.shape_cast %39 : vector<4x8xf32> to vector<1x4x8xf32>
    %42 = tpu.concatenate %40, %41 in 0 : vector<1x4x8xf32>, vector<1x4x8xf32> -> vector<2x4x8xf32>
    %43 = vector.extract_strided_slice %28 {offsets = [0, 0], sizes = [4, 8], strides = [1, 1]} : vector<4x16xf32> to vector<4x8xf32>
    %44 = vector.extract_strided_slice %28 {offsets = [0, 8], sizes = [4, 8], strides = [1, 1]} : vector<4x16xf32> to vector<4x8xf32>
    %45 = vector.shape_cast %43 : vector<4x8xf32> to vector<1x4x8xf32>
    %46 = vector.shape_cast %44 : vector<4x8xf32> to vector<1x4x8xf32>
    %47 = tpu.concatenate %45, %46 in 0 : vector<1x4x8xf32>, vector<1x4x8xf32> -> vector<2x4x8xf32>
    %48 = vector.shape_cast %3 : vector<4x8xf32> to vector<1x4x8xf32>
    %49 = vector.broadcast %48 : vector<1x4x8xf32> to vector<4x4x8xf32>
    %50 = arith.mulf %37, %49 : vector<4x4x8xf32>
    %51 = vector.extract_strided_slice %37 {offsets = [0, 0, 4], sizes = [4, 4, 4], strides = [1, 1, 1]} : vector<4x4x8xf32> to vector<4x4x4xf32>
    %cst_21 = arith.constant 0.000000e+00 : f32
    %52 = vector.broadcast %cst_21 : f32 to vector<4x4x4xf32>
    %53 = arith.subf %52, %51 : vector<4x4x4xf32>
    %54 = vector.extract_strided_slice %37 {offsets = [0, 0, 0], sizes = [4, 4, 4], strides = [1, 1, 1]} : vector<4x4x8xf32> to vector<4x4x4xf32>
    %55 = tpu.concatenate %53, %54 in 2 : vector<4x4x4xf32>, vector<4x4x4xf32> -> vector<4x4x8xf32>
    %56 = vector.shape_cast %5 : vector<4x8xf32> to vector<1x4x8xf32>
    %57 = vector.broadcast %56 : vector<1x4x8xf32> to vector<4x4x8xf32>
    %58 = arith.mulf %55, %57 : vector<4x4x8xf32>
    %59 = arith.addf %50, %58 : vector<4x4x8xf32>
    %cst_22 = arith.constant 0.353553385 : f32
    %60 = vector.broadcast %cst_22 : f32 to vector<4x4x8xf32>
    %61 = arith.mulf %59, %60 : vector<4x4x8xf32>
    %62 = vector.shape_cast %3 : vector<4x8xf32> to vector<1x4x8xf32>
    %63 = vector.broadcast %62 : vector<1x4x8xf32> to vector<2x4x8xf32>
    %64 = arith.mulf %42, %63 : vector<2x4x8xf32>
    %65 = vector.extract_strided_slice %42 {offsets = [0, 0, 4], sizes = [2, 4, 4], strides = [1, 1, 1]} : vector<2x4x8xf32> to vector<2x4x4xf32>
    %cst_23 = arith.constant 0.000000e+00 : f32
    %66 = vector.broadcast %cst_23 : f32 to vector<2x4x4xf32>
    %67 = arith.subf %66, %65 : vector<2x4x4xf32>
    %68 = vector.extract_strided_slice %42 {offsets = [0, 0, 0], sizes = [2, 4, 4], strides = [1, 1, 1]} : vector<2x4x8xf32> to vector<2x4x4xf32>
    %69 = tpu.concatenate %67, %68 in 2 : vector<2x4x4xf32>, vector<2x4x4xf32> -> vector<2x4x8xf32>
    %70 = vector.shape_cast %5 : vector<4x8xf32> to vector<1x4x8xf32>
    %71 = vector.broadcast %70 : vector<1x4x8xf32> to vector<2x4x8xf32>
    %72 = arith.mulf %69, %71 : vector<2x4x8xf32>
    %73 = arith.addf %64, %72 : vector<2x4x8xf32>
    %c0_24 = arith.constant 0 : index
    %c0_25 = arith.constant 0 : index
    %c0_26 = arith.constant 0 : index
    %c0_27 = arith.constant 0 : index
    %74 = vector.load %arg5[%c0_24, %c0_25, %c0_26, %c0_27] : memref<1x2x8x8xf32, #tpu.memory_space<vmem>>, vector<1x2x8x8xf32>
    %75 = vector.shape_cast %74 : vector<1x2x8x8xf32> to vector<2x8x8xf32>
    %76 = tpu.concatenate %75, %73 in 1 : vector<2x8x8xf32>, vector<2x4x8xf32> -> vector<2x12x8xf32>
    %c0_28 = arith.constant 0 : index
    %c0_29 = arith.constant 0 : index
    %c0_30 = arith.constant 0 : index
    %c0_31 = arith.constant 0 : index
    %77 = vector.load %arg6[%c0_28, %c0_29, %c0_30, %c0_31] : memref<1x2x8x8xf32, #tpu.memory_space<vmem>>, vector<1x2x8x8xf32>
    %78 = vector.shape_cast %77 : vector<1x2x8x8xf32> to vector<2x8x8xf32>
    %79 = tpu.concatenate %78, %47 in 1 : vector<2x8x8xf32>, vector<2x4x8xf32> -> vector<2x12x8xf32>
    %c0_32 = arith.constant 0 : index
    %c0_33 = arith.constant 0 : index
    %c0_34 = arith.constant 0 : index
    %c0_35 = arith.constant 0 : index
    %80 = vector.load %arg15[%c0_32, %c0_33, %c0_34, %c0_35] : memref<1x2x12x8xf32, #tpu.memory_space<vmem>>, vector<1x2x12x8xf32>
    %81 = vector.shape_cast %80 : vector<1x2x12x8xf32> to vector<2x12x8xf32>
    %82 = vector.shape_cast %76 : vector<2x12x8xf32> to vector<1x2x12x8xf32>
    tpu.vector_store %arg15[%c0_32, %c0_33, %c0_34, %c0_35], %82 {strides = array<i32>} : memref<1x2x12x8xf32, #tpu.memory_space<vmem>>, vector<1x2x12x8xf32>,
    %c0_36 = arith.constant 0 : index
    %c0_37 = arith.constant 0 : index
    %c0_38 = arith.constant 0 : index
    %c0_39 = arith.constant 0 : index
    %83 = vector.load %arg16[%c0_36, %c0_37, %c0_38, %c0_39] : memref<1x2x12x8xf32, #tpu.memory_space<vmem>>, vector<1x2x12x8xf32>
    %84 = vector.shape_cast %83 : vector<1x2x12x8xf32> to vector<2x12x8xf32>
    %85 = vector.shape_cast %79 : vector<2x12x8xf32> to vector<1x2x12x8xf32>
    tpu.vector_store %arg16[%c0_36, %c0_37, %c0_38, %c0_39], %85 {strides = array<i32>} : memref<1x2x12x8xf32, #tpu.memory_space<vmem>>, vector<1x2x12x8xf32>,
    %86 = vector.extract_strided_slice %76 {offsets = [0, 0, 0], sizes = [1, 12, 8], strides = [1, 1, 1]} : vector<2x12x8xf32> to vector<1x12x8xf32>
    %87 = vector.shape_cast %86 : vector<1x12x8xf32> to vector<12x8xf32>
    %88 = vector.extract_strided_slice %76 {offsets = [0, 0, 0], sizes = [1, 12, 8], strides = [1, 1, 1]} : vector<2x12x8xf32> to vector<1x12x8xf32>
    %89 = vector.shape_cast %88 : vector<1x12x8xf32> to vector<12x8xf32>
    %90 = vector.extract_strided_slice %76 {offsets = [1, 0, 0], sizes = [1, 12, 8], strides = [1, 1, 1]} : vector<2x12x8xf32> to vector<1x12x8xf32>
    %91 = vector.shape_cast %90 : vector<1x12x8xf32> to vector<12x8xf32>
    %92 = vector.extract_strided_slice %76 {offsets = [1, 0, 0], sizes = [1, 12, 8], strides = [1, 1, 1]} : vector<2x12x8xf32> to vector<1x12x8xf32>
    %93 = vector.shape_cast %92 : vector<1x12x8xf32> to vector<12x8xf32>
    %94 = vector.shape_cast %87 : vector<12x8xf32> to vector<1x12x8xf32>
    %95 = vector.shape_cast %89 : vector<12x8xf32> to vector<1x12x8xf32>
    %96 = vector.shape_cast %91 : vector<12x8xf32> to vector<1x12x8xf32>
    %97 = vector.shape_cast %93 : vector<12x8xf32> to vector<1x12x8xf32>
    %98 = tpu.concatenate %94, %95, %96, %97 in 0 : vector<1x12x8xf32>, vector<1x12x8xf32>, vector<1x12x8xf32>, vector<1x12x8xf32> -> vector<4x12x8xf32>
    %99 = vector.extract_strided_slice %79 {offsets = [0, 0, 0], sizes = [1, 12, 8], strides = [1, 1, 1]} : vector<2x12x8xf32> to vector<1x12x8xf32>
    %100 = vector.shape_cast %99 : vector<1x12x8xf32> to vector<12x8xf32>
    %101 = vector.extract_strided_slice %79 {offsets = [0, 0, 0], sizes = [1, 12, 8], strides = [1, 1, 1]} : vector<2x12x8xf32> to vector<1x12x8xf32>
    %102 = vector.shape_cast %101 : vector<1x12x8xf32> to vector<12x8xf32>
    %103 = vector.extract_strided_slice %79 {offsets = [1, 0, 0], sizes = [1, 12, 8], strides = [1, 1, 1]} : vector<2x12x8xf32> to vector<1x12x8xf32>
    %104 = vector.shape_cast %103 : vector<1x12x8xf32> to vector<12x8xf32>
    %105 = vector.extract_strided_slice %79 {offsets = [1, 0, 0], sizes = [1, 12, 8], strides = [1, 1, 1]} : vector<2x12x8xf32> to vector<1x12x8xf32>
    %106 = vector.shape_cast %105 : vector<1x12x8xf32> to vector<12x8xf32>
    %107 = vector.shape_cast %100 : vector<12x8xf32> to vector<1x12x8xf32>
    %108 = vector.shape_cast %102 : vector<12x8xf32> to vector<1x12x8xf32>
    %109 = vector.shape_cast %104 : vector<12x8xf32> to vector<1x12x8xf32>
    %110 = vector.shape_cast %106 : vector<12x8xf32> to vector<1x12x8xf32>
    %111 = tpu.concatenate %107, %108, %109, %110 in 0 : vector<1x12x8xf32>, vector<1x12x8xf32>, vector<1x12x8xf32>, vector<1x12x8xf32> -> vector<4x12x8xf32>
    "tpu.trace_start"() <{level = 10 : i32, message = "hsd,htd->hst"}> : () -> ()
    %cst_40 = arith.constant dense<0.000000e+00> : vector<4x4x12xf32>
    %112 = tpu.matmul %61, %98, %cst_40 {dimension_numbers = #tpu.dot_dimension_numbers<[2], [2], [1], [1], [0, 0, 0, 1, 1, 1], [0], [0]>} : vector<4x4x8xf32>, vector<4x12x8xf32>, vector<4x4x12xf32> -> vector<4x4x12xf32>
    "tpu.trace_stop"() : () -> ()
    %113 = vector.shape_cast %7 : vector<4x12xf32> to vector<1x4x12xf32>
    %114 = vector.broadcast %113 : vector<1x4x12xf32> to vector<4x4x12xf32>
    %115 = arith.addf %112, %114 : vector<4x4x12xf32>
    %cst_41 = arith.constant dense<0xFF800000> : vector<4x4xf32>
    %116 = vector.multi_reduction <maximumf>, %115, %cst_41 [2] : vector<4x4x12xf32> to vector<4x4xf32>
    %117 = vector.shape_cast %116 : vector<4x4xf32> to vector<4x4x1xf32>
    %118 = vector.broadcast %117 : vector<4x4x1xf32> to vector<4x4x12xf32>
    %119 = arith.subf %115, %118 : vector<4x4x12xf32>
    %120 = math.exp %119 : vector<4x4x12xf32>
    %cst_42 = arith.constant dense<0.000000e+00> : vector<4x4xf32>
    %121 = vector.multi_reduction <add>, %120, %cst_42 [2] : vector<4x4x12xf32> to vector<4x4xf32>
    %122 = vector.shape_cast %121 : vector<4x4xf32> to vector<4x4x1xf32>
    "tpu.trace_start"() <{level = 10 : i32, message = "hst,htd->hsd"}> : () -> ()
    %cst_43 = arith.constant dense<0.000000e+00> : vector<4x4x8xf32>
    %123 = tpu.matmul %120, %111, %cst_43 {dimension_numbers = #tpu.dot_dimension_numbers<[2], [1], [1], [2], [0, 0, 0, 1, 1, 2], [0], [0]>} : vector<4x4x12xf32>, vector<4x12x8xf32>, vector<4x4x8xf32> -> vector<4x4x8xf32>
    "tpu.trace_stop"() : () -> ()
    %124 = tpu.reciprocal %122 {approx = true} : vector<4x4x1xf32> -> vector<4x4x1xf32>
    %125 = vector.broadcast %124 : vector<4x4x1xf32> to vector<4x4x8xf32>
    %126 = arith.mulf %123, %125 : vector<4x4x8xf32>
    %127 = vector.extract_strided_slice %126 {offsets = [0, 0, 0], sizes = [1, 4, 8], strides = [1, 1, 1]} : vector<4x4x8xf32> to vector<1x4x8xf32>
    %128 = vector.shape_cast %127 : vector<1x4x8xf32> to vector<4x8xf32>
    %129 = vector.extract_strided_slice %126 {offsets = [1, 0, 0], sizes = [1, 4, 8], strides = [1, 1, 1]} : vector<4x4x8xf32> to vector<1x4x8xf32>
    %130 = vector.shape_cast %129 : vector<1x4x8xf32> to vector<4x8xf32>
    %131 = vector.extract_strided_slice %126 {offsets = [2, 0, 0], sizes = [1, 4, 8], strides = [1, 1, 1]} : vector<4x4x8xf32> to vector<1x4x8xf32>
    %132 = vector.shape_cast %131 : vector<1x4x8xf32> to vector<4x8xf32>
    %133 = vector.extract_strided_slice %126 {offsets = [3, 0, 0], sizes = [1, 4, 8], strides = [1, 1, 1]} : vector<4x4x8xf32> to vector<1x4x8xf32>
    %134 = vector.shape_cast %133 : vector<1x4x8xf32> to vector<4x8xf32>
    %135 = tpu.concatenate %128, %130, %132, %134 in 1 : vector<4x8xf32>, vector<4x8xf32>, vector<4x8xf32>, vector<4x8xf32> -> vector<4x32xf32>
    %c0_44 = arith.constant 0 : index
    %c0_45 = arith.constant 0 : index
    %136 = vector.load %arg11[%c0_44, %c0_45] : memref<32x32xf32, #tpu.memory_space<vmem>>, vector<32x32xf32>
    %cst_46 = arith.constant dense<0.000000e+00> : vector<4x32xf32>
    %137 = tpu.matmul %135, %136, %cst_46 {dimension_numbers = #tpu.dot_dimension_numbers<[1], [0], [0], [1], [0, 0, 1, 1], [], []>} : vector<4x32xf32>, vector<32x32xf32>, vector<4x32xf32> -> vector<4x32xf32>
    %138 = arith.addf %1, %137 : vector<4x32xf32>
    %139 = arith.mulf %138, %138 : vector<4x32xf32>
    %cst_47 = arith.constant dense<0.000000e+00> : vector<4xf32>
    %140 = vector.multi_reduction <add>, %139, %cst_47 [1] : vector<4x32xf32> to vector<4xf32>
    %141 = vector.shape_cast %140 : vector<4xf32> to vector<4x1xf32>
    %cst_48 = arith.constant 3.200000e+01 : f32
    %142 = vector.broadcast %cst_48 : f32 to vector<4x1xf32>
    %143 = arith.divf %141, %142 : vector<4x1xf32>
    %cst_49 = arith.constant 9.99999997E-7 : f32
    %144 = vector.broadcast %cst_49 : f32 to vector<4x1xf32>
    %145 = arith.addf %143, %144 : vector<4x1xf32>
    %146 = math.rsqrt %145 : vector<4x1xf32>
    %147 = vector.broadcast %146 : vector<4x1xf32> to vector<4x32xf32>
    %148 = arith.mulf %138, %147 : vector<4x32xf32>
    %c0_50 = arith.constant 0 : index
    %c0_51 = arith.constant 0 : index
    %149 = vector.load %arg8[%c0_50, %c0_51] : memref<1x32xf32, #tpu.memory_space<vmem>>, vector<1x32xf32>
    %150 = vector.broadcast %149 : vector<1x32xf32> to vector<4x32xf32>
    %151 = arith.mulf %148, %150 : vector<4x32xf32>
    %c0_52 = arith.constant 0 : index
    %c0_53 = arith.constant 0 : index
    %152 = vector.load %arg12[%c0_52, %c0_53] : memref<32x128xf32, #tpu.memory_space<vmem>>, vector<32x128xf32>
    %cst_54 = arith.constant dense<0.000000e+00> : vector<4x128xf32>
    %153 = tpu.matmul %151, %152, %cst_54 {dimension_numbers = #tpu.dot_dimension_numbers<[1], [0], [0], [1], [0, 0, 1, 1], [], []>} : vector<4x32xf32>, vector<32x128xf32>, vector<4x128xf32> -> vector<4x128xf32>
    %154 = vector.extract_strided_slice %153 {offsets = [0, 0], sizes = [4, 64], strides = [1, 1]} : vector<4x128xf32> to vector<4x64xf32>
    %155 = vector.extract_strided_slice %153 {offsets = [0, 64], sizes = [4, 64], strides = [1, 1]} : vector<4x128xf32> to vector<4x64xf32>
    %156 = arith.negf %154 : vector<4x64xf32>
    %157 = math.exp %156 : vector<4x64xf32>
    %cst_55 = arith.constant 1.000000e+00 : f32
    %158 = vector.broadcast %cst_55 : f32 to vector<4x64xf32>
    %159 = arith.addf %158, %157 : vector<4x64xf32>
    %160 = arith.divf %158, %159 : vector<4x64xf32>
    %161 = arith.mulf %154, %160 : vector<4x64xf32>
    %162 = arith.mulf %161, %155 : vector<4x64xf32>
    %c0_56 = arith.constant 0 : index
    %c0_57 = arith.constant 0 : index
    %163 = vector.load %arg13[%c0_56, %c0_57] : memref<64x32xf32, #tpu.memory_space<vmem>>, vector<64x32xf32>
    %cst_58 = arith.constant dense<0.000000e+00> : vector<4x32xf32>
    %164 = tpu.matmul %162, %163, %cst_58 {dimension_numbers = #tpu.dot_dimension_numbers<[1], [0], [0], [1], [0, 0, 1, 1], [], []>} : vector<4x64xf32>, vector<64x32xf32>, vector<4x32xf32> -> vector<4x32xf32>
    %165 = arith.addf %138, %164 : vector<4x32xf32>
    %c0_59 = arith.constant 0 : index
    %c0_60 = arith.constant 0 : index
    %c0_61 = arith.constant 0 : index
    %166 = vector.load %arg14[%c0_59, %c0_60, %c0_61] : memref<1x4x32xf32, #tpu.memory_space<vmem>>, vector<1x4x32xf32>
    %167 = vector.shape_cast %166 : vector<1x4x32xf32> to vector<4x32xf32>
    %168 = vector.shape_cast %165 : vector<4x32xf32> to vector<1x4x32xf32>
    tpu.vector_store %arg14[%c0_59, %c0_60, %c0_61], %168 {strides = array<i32>} : memref<1x4x32xf32, #tpu.memory_space<vmem>>, vector<1x4x32xf32>,
    return
  }
  func.func @transform_0(%arg0: i32) -> (i32, i32, i32) {
    %c0_i32 = arith.constant 0 : i32
    %c0_i32_0 = arith.constant 0 : i32
    %c0_i32_1 = arith.constant 0 : i32
    return %arg0, %c0_i32, %c0_i32_0 : i32, i32, i32
  }
  func.func @transform_1(%arg0: i32) -> (i32, i32, i32) {
    %c0_i32 = arith.constant 0 : i32
    %c0_i32_0 = arith.constant 0 : i32
    %c0_i32_1 = arith.constant 0 : i32
    return %arg0, %c0_i32, %c0_i32_0 : i32, i32, i32
  }
  func.func @transform_2(%arg0: i32) -> (i32, i32, i32) {
    %c0_i32 = arith.constant 0 : i32
    %c0_i32_0 = arith.constant 0 : i32
    %c0_i32_1 = arith.constant 0 : i32
    return %arg0, %c0_i32, %c0_i32_0 : i32, i32, i32
  }
  func.func @transform_3(%arg0: i32) -> (i32, i32, i32, i32) {
    %c0_i32 = arith.constant 0 : i32
    %c0_i32_0 = arith.constant 0 : i32
    %c0_i32_1 = arith.constant 0 : i32
    %c0_i32_2 = arith.constant 0 : i32
    return %arg0, %c0_i32, %c0_i32_0, %c0_i32_1 : i32, i32, i32, i32
  }
  func.func @transform_4(%arg0: i32) -> (i32, i32, i32, i32) {
    %c0_i32 = arith.constant 0 : i32
    %c0_i32_0 = arith.constant 0 : i32
    %c0_i32_1 = arith.constant 0 : i32
    %c0_i32_2 = arith.constant 0 : i32
    return %arg0, %c0_i32, %c0_i32_0, %c0_i32_1 : i32, i32, i32, i32
  }
  func.func @transform_5(%arg0: i32) -> (i32, i32, i32, i32) {
    %c0_i32 = arith.constant 0 : i32
    %c0_i32_0 = arith.constant 0 : i32
    %c0_i32_1 = arith.constant 0 : i32
    %c0_i32_2 = arith.constant 0 : i32
    return %arg0, %c0_i32, %c0_i32_0, %c0_i32_1 : i32, i32, i32, i32
  }
  func.func @transform_6(%arg0: i32) -> (i32, i32) {
    %c0_i32 = arith.constant 0 : i32
    %c0_i32_0 = arith.constant 0 : i32
    %c0_i32_1 = arith.constant 0 : i32
    return %c0_i32, %c0_i32_0 : i32, i32
  }
  func.func @transform_7(%arg0: i32) -> (i32, i32) {
    %c0_i32 = arith.constant 0 : i32
    %c0_i32_0 = arith.constant 0 : i32
    %c0_i32_1 = arith.constant 0 : i32
    return %c0_i32, %c0_i32_0 : i32, i32
  }
  func.func @transform_8(%arg0: i32) -> (i32, i32) {
    %c0_i32 = arith.constant 0 : i32
    %c0_i32_0 = arith.constant 0 : i32
    %c0_i32_1 = arith.constant 0 : i32
    return %c0_i32, %c0_i32_0 : i32, i32
  }
  func.func @transform_9(%arg0: i32) -> (i32, i32) {
    %c0_i32 = arith.constant 0 : i32
    %c0_i32_0 = arith.constant 0 : i32
    %c0_i32_1 = arith.constant 0 : i32
    return %c0_i32, %c0_i32_0 : i32, i32
  }
  func.func @transform_10(%arg0: i32) -> (i32, i32) {
    %c0_i32 = arith.constant 0 : i32
    %c0_i32_0 = arith.constant 0 : i32
    %c0_i32_1 = arith.constant 0 : i32
    return %c0_i32, %c0_i32_0 : i32, i32
  }
  func.func @transform_11(%arg0: i32) -> (i32, i32) {
    %c0_i32 = arith.constant 0 : i32
    %c0_i32_0 = arith.constant 0 : i32
    %c0_i32_1 = arith.constant 0 : i32
    return %c0_i32, %c0_i32_0 : i32, i32
  }
  func.func @transform_12(%arg0: i32) -> (i32, i32) {
    %c0_i32 = arith.constant 0 : i32
    %c0_i32_0 = arith.constant 0 : i32
    %c0_i32_1 = arith.constant 0 : i32
    return %c0_i32, %c0_i32_0 : i32, i32
  }
  func.func @transform_13(%arg0: i32) -> (i32, i32, i32) {
    %c0_i32 = arith.constant 0 : i32
    %c0_i32_0 = arith.constant 0 : i32
    %c0_i32_1 = arith.constant 0 : i32
    return %arg0, %c0_i32, %c0_i32_0 : i32, i32, i32
  }
  func.func @transform_14(%arg0: i32) -> (i32, i32, i32, i32) {
    %c0_i32 = arith.constant 0 : i32
    %c0_i32_0 = arith.constant 0 : i32
    %c0_i32_1 = arith.constant 0 : i32
    %c0_i32_2 = arith.constant 0 : i32
    return %arg0, %c0_i32, %c0_i32_0, %c0_i32_1 : i32, i32, i32, i32
  }
  func.func @transform_15(%arg0: i32) -> (i32, i32, i32, i32) {
    %c0_i32 = arith.constant 0 : i32
    %c0_i32_0 = arith.constant 0 : i32
    %c0_i32_1 = arith.constant 0 : i32
    %c0_i32_2 = arith.constant 0 : i32
    return %arg0, %c0_i32, %c0_i32_0, %c0_i32_1 : i32, i32, i32, i32
  }
}

</mosaic_0001>

<bundles_post_ra>
// kernel: qwen_block_cache.1
= control target key start
LH: loop header
LB: loop body
LE: loop exit
PB: predicated region body
PF: predicated region fallthrough
CT: control target
= control target key end

     0   :  { %s2780_s0 = inlined_call_operand.vmem [shape: f32[2,4,32], index: 0, kind: input, shape index: {}]   ;;  %s2781_s1 = inlined_call_operand.vmem [shape: f32[2,4,8], index: 1, kind: input, shape index: {}]   ;;  %s2782_s2 = inlined_call_operand.vmem [shape: f32[2,4,8], index: 2, kind: input, shape index: {}]   ;;  %s2783_s3 = inlined_call_operand.vmem [shape: f32[2,1,4,12], index: 3, kind: input, shape index: {}]   ;;  %s2784_s4 = inlined_call_operand.vmem [shape: f32[2,2,8,8], index: 4, kind: input, shape index: {}]   ;;  %s2785_s5 = inlined_call_operand.vmem [shape: f32[2,2,8,8], index: 5, kind: input, shape index: {}]   ;;  %s2786_s6 = inlined_call_operand.vmem [shape: f32[1,32], index: 6, kind: input, shape index: {}]   ;;  %s2787_s7 = inlined_call_operand.vmem [shape: f32[1,32], index: 7, kind: input, shape index: {}]   ;;  %s2788_s8 = inlined_call_operand.vmem [shape: f32[32,64], index: 8, kind: input, shape index: {}]   ;;  %s2789_s9 = inlined_call_operand.vmem [shape: f32[1,64], index: 9, kind: input, shape index: {}]   ;;  %s2790_s10 = inlined_call_operand.vmem [shape: f32[32,32], index: 10, kind: input, shape index: {}]   ;;  %s2791_s11 = inlined_call_operand.vmem [shape: f32[32,128], index: 11, kind: input, shape index: {}]   ;;  %s2792_s12 = inlined_call_operand.vmem [shape: f32[64,32], index: 12, kind: input, shape index: {}]   ;;  %s2793_s13 = inlined_call_operand.hbm [shape: f32[2,4,32], index: 13, kind: output, shape index: {0}]   ;;  %s2794_s14 = inlined_call_operand.vmem [shape: f32[2,2,12,8], index: 14, kind: output, shape index: {1}]   ;;  %s2795_s15 = inlined_call_operand.vmem [shape: f32[2,2,12,8], index: 15, kind: output, shape index: {2}]  }
   0x1   :  { %2799 = sst [smem:[#allocation8_spill]] %s2780_s0 }
   0x2   :  { %2800 = sst [smem:[#allocation9_spill]] %s2781_s1 }
   0x3   :  { %2801 = sst [smem:[#allocation10_spill]] %s2782_s2 }
   0x4   :  { %21 = vsyncpa [#allocation3], 0 }
   0x5   :  { %23 = vsyncpa [#allocation3 + $0x1], 0  ;;  %s2411_s18 = smov 0   ;;  %s2413_s19 = smov 0  }
   0x6   :  { %s2415_s20 = smov 0   ;;  %s2417_s21 = smov 0  }
   0x7 LB: > { %2802 = sst [smem:[#allocation5_spill]] %s2308_s20  ;;  %s2432_s22 = sadd.s32 4294967295, %s2312_s21   ;;  %s2312_s21 = sphi %s2417_s21, %s2810_s21   ;;  %s2308_s20 = sphi %s2415_s20, %s2812_s20   ;;  %s2304_s19 = sphi %s2413_s19, %s2814_s19   ;;  %s2300_s18 = sphi %s2411_s18, %s2813_s18  }
   0x8   : > { %s1964_s23 = sadd.s32 4294967294, %s2312_s21   ;;  %s2436_s24 = sadd.s32 1, %s2312_s21  }
   0x9   : > { %2803 = sst [smem:[#allocation6_spill]] %s2436_s24  ;;  %s339_s25 = sadd.s32 1, %s2308_s20 }
   0xa   : > { %s336_s26 = ssub.s32 %s2312_s21, %s2436_s24  ;;  %p349_p0 = scmp.ne.s32.totalorder %s2308_s20, %s2304_s19 }
   0xb   : > { %p337_p1 = scmp.eq.s32.totalorder %s336_s26, 0  ;;  %p350_p2 = scmp.eq.s32.totalorder %s2432_s22, 1 }
   0xc   : > { %p355_p3 = scmp.ne.s32.totalorder %s2304_s19, %s2300_s18  ;;  %p356_p4 = scmp.eq.s32.totalorder %s1964_s23, 1 }
   0xd   : > { %s2447_s27 = scalar_select %p337_p1, %s2308_s20, %s339_s25  }
   0xe   : > { %p2449_p5 = por %p350_p2, %p349_p0  ;;  %p2453_p6 = por %p356_p4, %p355_p3 }
   0xf   : > { %2804 = sst [smem:[#allocation7_spill]] %s2447_s27  ;;  %p1967_p7 = scmp.ge.s32.totalorder %s2312_s21, 1 }
  0x10   : > { %p491_p8 = scmp.lt.s32.totalorder %s2312_s21, 3 }
  0x12   : > { %p492_p9 = pnand %p1967_p7, %p491_p8 }
  0x13   : > { %p570_p10 = scmp.lt.s32.totalorder (!%p492_p9), %s2432_s22, 1  ;;  %s2807_s0 = sld [smem:[#allocation8_spill]] (!%p492_p9) }
  0x14   : > { %495 = sbr.rel (%p492_p9) target bundleno = 2409 (0x969), region = 72  ;;  %s2316_s23 = smov (!%p492_p9), 100  }
  0x15   : > { %s2317_s20 = smov (!%p492_p9), 120   ;;  %s2318_s24 = smov (!%p492_p9), 92  }
  0x16   : > { %s2808_s2 = sld [smem:[#allocation10_spill]] (!%p492_p9)  ;;  %s2321_s27 = smov (!%p492_p9), 104  }
  0x17   : > { %s2809_s1 = sld [smem:[#allocation9_spill]] (!%p492_p9)  ;;  %s2323_s17 = smov (!%p492_p9), 4  }
  0x19   : > { %s2461_s30 = scalar_select %p570_p10, %s2432_s22, 1  ;;  %vm611_vm0 = vcmask 257024   ;;  %v631_v3 = vld [vmem:[%s2788_s8 + $0x18] sm:$0xff]  ;;  %v2314_v4 = vmov 0.0   ;;  %v630_v5 = vld [vmem:[%s2788_s8 + $0x10] sm:$0xff]  ;;  %vm2315_vm1 = vmmov 0  }
  0x1a   : > { %2065 = vmatprep.subr.mxu1 %v2314_v4  ;;  %2073 = vmatprep.mubr.msk.f32.mxu1 %vm2315_vm1, %v2314_v4  ;;  %v629_v6 = vld [vmem:[%s2788_s8 + $0x8] sm:$0xff]  ;;  %v628_v7 = vld [vmem:[%s2788_s8] sm:$0xff]  ;;  %vm639_vm2 = vcmask 261120   ;;  %vm759_vm3 = vcmask 31744   ;;  %vm826_vm4 = vcmask 64512   ;;  %vm828_vm5 = vcmask 60416  }
  0x1b   : > { %s2464_s16 = sshll.u32 %s2461_s30, 2  ;;  %2066 = vmatpush3.msra.mxu1 %v631_v3  ;;  %2083 = vmatprep.subr.mxu0 %v2314_v4  ;;  %v1981_v12 = vld [vmem:[%s2786_s6] ss:$0 sm:$0xff]  ;;  %vm1138_vm6 = vcmask 93184   ;;  %vm1179_vm7 = vcmask 1043456   ;;  %vm1175_vm8 = vcmask 97280  }
  0x1c   : > { %s573_s25 = scalar_lea.vmem %s2807_s0, %s2464_s16  ;;  %2067 = vmatprep.subr.mxu1 %v2314_v4  ;;  %2087 = vmatprep.mubr.msk.f32.mxu0 %vm2315_vm1, %v2314_v4  ;;  %v1982_v15 = vld [vmem:[%s2789_s9] ss:$0 sm:$0xff]  ;;  %s581_s26 = scalar_lea.vmem %s2808_s2, %s2464_s16  ;;  %vm1494_vm9 = vcmask 130048   ;;  %vm1496_vm10 = vcmask 195584   ;;  %vm1689_vm11 = vcmask 523264  }
  0x1d   : > { %v2470_v0 = vld [vmem:[%s573_s25] sm:$0xf]  ;;  %2068 = vmatpush3.msra.mxu1 %v630_v5  ;;  %s577_s0 = scalar_lea.vmem %s2809_s1, %s2464_s16  ;;  %s2322_s25 = smov 124  }
  0x1e   : > { %v610_v1 = vmul.f32 %v2470_v0, %v2470_v0  ;;  %2069 = vmatprep.subr.mxu1 %v2314_v4  ;;  %v2524_v24 = vld [vmem:[%s581_s26] sm:$0xf]  ;;  %s2013_s26 = sshll.u32 %s2461_s30, 4 }
  0x1f   : > { %2070 = vmatpush3.msra.mxu1 %v629_v6  ;;  %v2527_v26 = vld [vmem:[%s577_s0] sm:$0xf]  ;;  %s2015_s0 = sshll.u32 %s2461_s30, 5  ;;  %s590_s1 = scalar_lea.vmem %s2784_s4, %s2013_s26 }
  0x20   : > { %v612_v2 = vsel %vm611_vm0, %v610_v1, 0.0  ;;  %2071 = vmatprep.subr.mxu1 %v2314_v4  ;;  %v808_v32 = vld [vmem:[%s590_s1] sm:$0xff]  ;;  %v809_v41 = vld [vmem:[%s590_s1 + $0x8] sm:$0xff]  ;;  %s2325_s1 = smov 80  }
  0x21   : > { %613 = vadd.xlane.f32.xlu0 %v612_v2  ;;  %2072 = vmatpush3.msra.mxu1 %v628_v7 }
  0x22   : > { %2076 = vmatprep.subr.mxu1 %v2314_v4 }
  0xaa   : > { %v614_v8 = vpop.xlane.xlu0 %613 }
  0xab   : > { %v616_v9 = vmul.f32 0.03125, %v614_v8 }
  0xad   : > { %v617_v10 = vadd.f32 1e-06, %v616_v9 }
  0xaf   : > { %2228 = vrsqrt.f32 %v617_v10 }
  0xbc   : > { %v2229_v11 = vpop.eup %2228 }
  0xbd   : > { %v619_v13 = vmul.f32 %v2229_v11, %v2470_v0 }
  0xbf   : > { %v627_v14 = vmul.f32 %v1981_v12, %v619_v13 }
  0xc1   : > { %2074 = vmatmul.mubr.msk.f32.vlgmr.msra.gmra.mxu1 %vm639_vm2, %v627_v14 }
  0xc2   : > { %2080 = vmatprep.mubr.msk.f32.mxu1 %vm2315_vm1, %v2314_v4 }
 0x181   : > { %v709_v16 = vpop.f32.mrf.mxu1 }
 0x182   : > { %v2507_v17 = vadd.f32 %v1982_v15, %v709_v16 }
 0x183   : > { %v2075_v18 = vpop.f32.mrf.mxu1 }
 0x184   : > { %788 = vrot.lane.b32.xlu1 %v2507_v17, %s2316_s23  ;;  %714 = vrot.lane.b32.xlu0 %v2507_v17, %s2317_s20  ;;  %v727_v19 = vsub.f32 0.0, %v2507_v17  ;;  %s2324_s20 = smov 96   ;;  %v723_v49 = vmul.f32 %v2507_v17, %v2527_v26 }
 0x188   : > { %782 = vrot.lane.b32.xlu1 %v727_v19, %s2318_s24 }
 0x1f6   : > { %v2512_v20 = vpop.permute.xlu0 %714  ;;  %v789_v21 = vpop.permute.xlu1 %788 }
 0x1f7   : > { %v728_v22 = vsub.f32 0.0, %v2512_v20  ;;  %v724_v56 = vmul.f32 %v2512_v20, %v2527_v26 }
 0x1f9   : > { %784 = vrot.lane.b32.xlu1 %v728_v22, %s2318_s24  ;;  %s2319_s24 = smov 32  }
 0x1fa   : > { %v783_v23 = vpop.permute.xlu1 %782 }
 0x1fb   : > { %v794_v25 = vsel %vm759_vm3, %v783_v23, %v789_v21 }
 0x1fc   : > { %v796_v27 = vmul.f32 %v794_v25, %v2524_v24 }
 0x1fd   : > { %790 = vrot.lane.b32.xlu1 %v2512_v20, %s2316_s23  ;;  %s2320_s23 = smov 112  }
 0x201   : > { %777 = vrot.lane.b32.xlu1 %v2527_v26, %s2319_s24 }
 0x205   : > { %800 = vrot.lane.b32.xlu1 %v796_v27, %s2319_s24 }
 0x209   : > { %717 = vrot.lane.b32.xlu1 %v2507_v17, %s2320_s23 }
 0x20d   : > { %720 = vrot.lane.b32.xlu1 %v2507_v17, %s2321_s27  ;;  %s2547_s27 = scalar_lea.vmem %s2794_s14, %s2015_s0 }
 0x20e   : > { %827 = vst.msk [vmem:[%s2547_s27] sm:$0xff] %vm826_vm4, %v808_v32  ;;  %830 = vst.msk [vmem:[%s2547_s27 + $0x10] sm:$0xff] %vm826_vm4, %v809_v41 }
 0x211   : > { %735 = vrot.lane.b32.xlu1 %v727_v19, %s2322_s25 }
 0x215   : > { %737 = vrot.lane.b32.xlu1 %v728_v22, %s2322_s25 }
 0x26b   : > { %v785_v28 = vpop.permute.xlu1 %784 }
 0x26f   : > { %v791_v29 = vpop.permute.xlu1 %790 }
 0x270   : > { %v795_v30 = vsel %vm759_vm3, %v785_v28, %v791_v29 }
 0x271   : > { %v797_v31 = vmul.f32 %v795_v30, %v2524_v24 }
 0x273   : > { %802 = vrot.lane.b32.xlu0 %v797_v31, %s2319_s24  ;;  %v778_v33 = vpop.permute.xlu1 %777  ;;  %s585_s24 = scalar_lea.vmem %s2783_s3, %s2464_s16 }
 0x274   : > { %v780_v34 = vmul.f32 %v778_v33, %v2507_v17  ;;  %v781_v42 = vmul.f32 %v778_v33, %v2512_v20  ;;  %v609_v13 = vld [vmem:[%s585_s24] sm:$0xf]  ;;  %s2010_s24 = sshll.u32 %s2432_s22, 6  ;;  %s2330_s22 = smov [#allocation2]  }
 0x275   : > { %s2256_s30 = sshll.u32 %s2330_s22, 4  ;;  %s2257_s30 = int_to_ptr.vmem [resolvable:$false] %s2256_s30 }
 0x277   : > { %747 = vrot.lane.b32.xlu0 %v2507_v17, %s2323_s17  ;;  %v801_v35 = vpop.permute.xlu1 %800 }
 0x278   : > { %v806_v36 = vadd.f32 %v801_v35, %v780_v34 }
 0x27b   : > { %812 = vrot.lane.b32.xlu0 %v806_v36, %s2324_s20  ;;  %v718_v37 = vpop.permute.xlu1 %717 }
 0x27c   : > { %v729_v38 = vsub.f32 0.0, %v718_v37  ;;  %v725_v1 = vmul.f32 %v718_v37, %v2527_v26 }
 0x27e   : > { %739 = vrot.lane.b32.xlu1 %v729_v38, %s2322_s25 }
 0x27f   : > { %749 = vrot.lane.b32.xlu0 %v2512_v20, %s2323_s17  ;;  %v721_v39 = vpop.permute.xlu1 %720 }
 0x280   : > { %v730_v40 = vsub.f32 0.0, %v721_v39  ;;  %v726_v8 = vmul.f32 %v721_v39, %v2527_v26 }
 0x283   : > { %751 = vrot.lane.b32.xlu0 %v718_v37, %s2323_s17  ;;  %v736_v45 = vpop.permute.xlu1 %735 }
 0x287   : > { %741 = vrot.lane.b32.xlu0 %v730_v40, %s2322_s25  ;;  %v738_v52 = vpop.permute.xlu1 %737 }
 0x2e5   : > { %v803_v43 = vpop.permute.xlu0 %802 }
 0x2e6   : > { %v807_v44 = vadd.f32 %v803_v43, %v781_v42 }
 0x2e8   : > { %814 = vrot.lane.b32.xlu1 %v807_v44, %s2324_s20  ;;  %s2619_s20 = scalar_lea.vmem %s2795_s15, %s2015_s0  ;;  %s2329_s0 = smov 64  }
 0x2e9   : > { %v748_v46 = vpop.permute.xlu0 %747 }
 0x2ea   : > { %v760_v47 = vsel %vm759_vm3, %v736_v45, %v748_v46 }
 0x2eb   : > { %v764_v48 = vmul.f32 %v760_v47, %v2524_v24 }
 0x2ec   : > { %753 = vrot.lane.b32.xlu1 %v721_v39, %s2323_s17  ;;  %s2327_s17 = smov 16  }
 0x2ed   : > { %v813_v50 = vpop.permute.xlu0 %812  ;;  %v768_v51 = vadd.f32 %v764_v48, %v723_v49 }
 0x2ee   : > { %829 = vst.msk [vmem:[%s2547_s27 + $0x8] sm:$0xf] %vm828_vm5, %v813_v50  ;;  %2077 = vmatpush3.xpose.msk.msra.mxu1 %vm826_vm4, %v813_v50  ;;  %2084 = vmatpush3.xpose.msk.msra.mxu0 %vm826_vm4, %v813_v50 }
 0x2ef   : > { %2078 = vmatprep.subr.mxu1 %v2314_v4  ;;  %2085 = vmatprep.subr.mxu0 %v2314_v4  ;;  %v772_v55 = vmul.f32 0.35355338, %v768_v51 }
 0x2f0   : > { %v740_v61 = vpop.permute.xlu1 %739 }
 0x2f1   : > { %v750_v53 = vpop.permute.xlu0 %749 }
 0x2f2   : > { %v761_v54 = vsel %vm759_vm3, %v738_v52, %v750_v53  ;;  %2079 = vmatpush3.xpose.msk.msra.mxu1 %vm826_vm4, %v808_v32  ;;  %2086 = vmatpush3.xpose.msk.msra.mxu0 %vm826_vm4, %v808_v32 }
 0x2f3   : > { %v765_v57 = vmul.f32 %v761_v54, %v2524_v24  ;;  %2090 = vmatprep.subr.mxu1 %v2314_v4  ;;  %2097 = vmatprep.subr.mxu0 %v2314_v4 }
 0x2f5   : > { %v769_v58 = vadd.f32 %v765_v57, %v724_v56  ;;  %2081 = vmatmul.mubr.msk.f32.vlgmr.msra.gmra.mxu1 %vm826_vm4, %v772_v55  ;;  %v752_v60 = vpop.permute.xlu0 %751  ;;  %v1501_v55 = vld [vmem:[%s2790_s10 + $0x18] sm:$0xff] }
 0x2f6   : > { %2094 = vmatprep.mubr.msk.f32.mxu1 %vm2315_vm1, %v2314_v4  ;;  %v762_v62 = vsel %vm759_vm3, %v740_v61, %v752_v60 }
 0x2f7   : > { %v773_v59 = vmul.f32 0.35355338, %v769_v58  ;;  %v766_v63 = vmul.f32 %v762_v62, %v2524_v24 }
 0x2f9   : > { %2088 = vmatmul.mubr.msk.f32.vlgmr.msra.gmra.mxu0 %vm826_vm4, %v773_v59  ;;  %v770_v3 = vadd.f32 %v766_v63, %v725_v1  ;;  %v742_v5 = vpop.permute.xlu0 %741  ;;  %v1500_v1 = vld [vmem:[%s2790_s10 + $0x10] sm:$0xff] }
 0x2fa   : > { %2101 = vmatprep.mubr.msk.f32.mxu0 %vm2315_vm1, %v2314_v4 }
 0x2fb   : > { %v774_v9 = vmul.f32 0.35355338, %v770_v3  ;;  %v1498_v3 = vld [vmem:[%s2790_s10] sm:$0xff] }
 0x35a   : > { %v815_v2 = vpop.permute.xlu1 %814 }
 0x35b   : > { %831 = vst.msk [vmem:[%s2547_s27 + $0x18] sm:$0xf] %vm828_vm5, %v815_v2  ;;  %2091 = vmatpush3.xpose.msk.msra.mxu1 %vm826_vm4, %v815_v2  ;;  %2098 = vmatpush3.xpose.msk.msra.mxu0 %vm826_vm4, %v815_v2  ;;  %s595_s27 = scalar_lea.vmem %s2785_s5, %s2013_s26  ;;  %s2326_s26 = smov 8   ;;  %v1499_v2 = vld [vmem:[%s2790_s10 + $0x8] sm:$0xff] }
 0x35c   : > { %2092 = vmatprep.subr.mxu1 %v2314_v4  ;;  %2099 = vmatprep.subr.mxu0 %v2314_v4  ;;  %v819_v33 = vld [vmem:[%s595_s27 + $0x8] sm:$0xff] }
 0x35d   : > { %834 = vst.msk [vmem:[%s2619_s20 + $0x10] sm:$0xff] %vm826_vm4, %v819_v33 }
 0x35e   : > { %v754_v6 = vpop.permute.xlu1 %753 }
 0x35f   : > { %v763_v7 = vsel %vm759_vm3, %v742_v5, %v754_v6  ;;  %2093 = vmatpush3.xpose.msk.msra.mxu1 %vm826_vm4, %v809_v41  ;;  %2100 = vmatpush3.xpose.msk.msra.mxu0 %vm826_vm4, %v809_v41 }
 0x360   : > { %v767_v10 = vmul.f32 %v763_v7, %v2524_v24  ;;  %2104 = vmatprep.subr.mxu1 %v2314_v4  ;;  %2118 = vmatprep.subr.mxu0 %v2314_v4  ;;  %v818_v24 = vld [vmem:[%s595_s27] sm:$0xff] }
 0x361   : > { %832 = vst.msk [vmem:[%s2619_s20] sm:$0xff] %vm826_vm4, %v818_v24 }
 0x362   : > { %v771_v11 = vadd.f32 %v767_v10, %v726_v8  ;;  %2095 = vmatmul.mubr.msk.f32.vlgmr.msra.gmra.mxu1 %vm826_vm4, %v774_v9 }
 0x363   : > { %2108 = vmatprep.mubr.msk.f32.mxu1 %vm2315_vm1, %v2314_v4 }
 0x364   : > { %v775_v12 = vmul.f32 0.35355338, %v771_v11 }
 0x366   : > { %2102 = vmatmul.mubr.msk.f32.vlgmr.msra.gmra.mxu0 %vm826_vm4, %v775_v12 }
 0x367   : > { %2122 = vmatprep.mubr.msk.f32.mxu0 %vm2315_vm1, %v2314_v4 }
 0x3b5   : > { %v910_v14 = vpop.f32.mrf.mxu1 }
 0x3b6   : > { %v911_v15 = vadd.f32 %v910_v14, %v609_v13 }
 0x3b7   : > { %v2082_v16 = vpop.f32.mrf.mxu1 }
 0x3b8   : > { %v1139_v18 = vsel %vm1138_vm6, %v911_v15, -inf }
 0x3b9   : > { %v983_v19 = vpop.f32.mrf.mxu0  ;;  %1140 = vmax.xlane.f32.xlu0 %v1139_v18 }
 0x3ba   : > { %v984_v21 = vadd.f32 %v983_v19, %v609_v13 }
 0x3bb   : > { %v2089_v22 = vpop.f32.mrf.mxu0 }
 0x3bc   : > { %v1142_v23 = vsel %vm1138_vm6, %v984_v21, -inf }
 0x3bd   : > { %1143 = vmax.xlane.f32.xlu1 %v1142_v23 }
 0x3ce   : > { %820 = vrot.lane.b32.xlu1 %v2507_v17, %s2325_s1 }
 0x422   : > { %v1061_v25 = vpop.f32.mrf.mxu1 }
 0x423   : > { %v1062_v26 = vadd.f32 %v1061_v25, %v609_v13 }
 0x424   : > { %v2096_v27 = vpop.f32.mrf.mxu1 }
 0x425   : > { %v1145_v28 = vsel %vm1138_vm6, %v1062_v26, -inf }
 0x426   : > { %v1134_v29 = vpop.f32.mrf.mxu0  ;;  %1146 = vmax.xlane.f32.xlu0 %v1145_v28 }
 0x427   : > { %v1135_v30 = vadd.f32 %v1134_v29, %v609_v13  ;;  %v1595_v29 = vld [vmem:[%s2791_s11 + $0x18] sm:$0xff] }
 0x428   : > { %v2103_v31 = vpop.f32.mrf.mxu0 }
 0x429   : > { %v1148_v32 = vsel %vm1138_vm6, %v1135_v30, -inf  ;;  %v1592_v31 = vld [vmem:[%s2791_s11] sm:$0xff] }
 0x42a   : > { %1149 = vmax.xlane.f32.xlu0 %v1148_v32 }
 0x440   : > { %822 = vrot.lane.b32.xlu0 %v2512_v20, %s2325_s1 }
 0x442   : > { %v1141_v17 = vpop.xlane.xlu0 %1140 }
 0x443   : > { %v1151_v34 = vsub.f32 %v911_v15, %v1141_v17 }
 0x445   : > { %v1155_v35 = vmul.f32 1.442695, %v1151_v34 }
 0x446   : > { %v1144_v36 = vpop.xlane.xlu1 %1143 }
 0x447   : > { %2230 = vpow2.f32 %v1155_v35  ;;  %v1152_v37 = vsub.f32 %v984_v21, %v1144_v36  ;;  %v2005_v35 = vld [vmem:[%s2787_s7] ss:$0 sm:$0xff] }
 0x449   : > { %v1157_v38 = vmul.f32 1.442695, %v1152_v37 }
 0x44a   : > { %v821_v39 = vpop.permute.xlu1 %820 }
 0x44b   : > { %2232 = vpow2.f32 %v1157_v38  ;;  %833 = vst.msk [vmem:[%s2619_s20 + $0x8] sm:$0xf] %vm828_vm5, %v821_v39  ;;  %2105 = vmatpush3.msk.msra.mxu1 %vm1179_vm7, %v821_v39  ;;  %v1688_v38 = vld [vmem:[%s2792_s12 + $0x38] sm:$0xff] }
 0x44c   : > { %2106 = vmatprep.subr.mxu1 %v2314_v4 }
 0x44d   : > { %2107 = vmatpush3.msra.mxu1 %v818_v24 }
 0x44e   : > { %2111 = vmatprep.subr.mxu1 %v2314_v4 }
 0x454   : > { %v2231_v20 = vpop.eup %2230 }
 0x455   : > { %2109 = vmatmul.mubr.msk.f32.vlgmr.msra.gmra.mxu1 %vm1175_vm8, %v2231_v20  ;;  %v1163_v52 = vsel %vm1138_vm6, %v2231_v20, 0.0  ;;  %v1686_v20 = vld [vmem:[%s2792_s12 + $0x28] sm:$0xff] }
 0x456   : > { %2112 = vmatpush3.msk.msra.mxu1 %vm1179_vm7, %v821_v39  ;;  %2115 = vmatprep.mubr.msk.f32.mxu1 %vm2315_vm1, %v2314_v4  ;;  %v1687_v39 = vld [vmem:[%s2792_s12 + $0x30] sm:$0xff] }
 0x457   : > { %2113 = vmatprep.subr.mxu1 %v2314_v4 }
 0x458   : > { %v2233_v40 = vpop.eup %2232  ;;  %2114 = vmatpush3.msra.mxu1 %v818_v24 }
 0x459   : > { %2116 = vmatmul.mubr.msk.f32.vlgmr.msra.gmra.mxu1 %vm1175_vm8, %v2233_v40  ;;  %v1166_v41 = vsel %vm1138_vm6, %v2233_v40, 0.0  ;;  %2125 = vmatprep.subr.mxu1 %v2314_v4  ;;  %v1685_v40 = vld [vmem:[%s2792_s12 + $0x20] sm:$0xff] }
 0x45a   : > { %1167 = vadd.xlane.f32.xlu1 %v1166_v41  ;;  %2129 = vmatprep.mubr.msk.f32.mxu1 %vm2315_vm1, %v2314_v4  ;;  %v1684_v41 = vld [vmem:[%s2792_s12 + $0x18] sm:$0xff] }
 0x4af   : > { %v1147_v42 = vpop.xlane.xlu0 %1146 }
 0x4b0   : > { %v1153_v43 = vsub.f32 %v1062_v26, %v1147_v42  ;;  %v1683_v42 = vld [vmem:[%s2792_s12 + $0x10] sm:$0xff] }
 0x4b2   : > { %v1159_v44 = vmul.f32 1.442695, %v1153_v43  ;;  %v1682_v43 = vld [vmem:[%s2792_s12 + $0x8] sm:$0xff] }
 0x4b3   : > { %v1150_v45 = vpop.xlane.xlu0 %1149 }
 0x4b4   : > { %2234 = vpow2.f32 %v1159_v44  ;;  %v1154_v46 = vsub.f32 %v1135_v30, %v1150_v45  ;;  %v1594_v30 = vld [vmem:[%s2791_s11 + $0x10] sm:$0xff]  ;;  %v1681_v44 = vld [vmem:[%s2792_s12] sm:$0xff] }
 0x4b6   : > { %v1161_v47 = vmul.f32 1.442695, %v1154_v46 }
 0x4b7   : > { %v823_v48 = vpop.permute.xlu0 %822 }
 0x4b8   : > { %2236 = vpow2.f32 %v1161_v47  ;;  %835 = vst.msk [vmem:[%s2619_s20 + $0x18] sm:$0xf] %vm828_vm5, %v823_v48  ;;  %2119 = vmatpush3.msk.msra.mxu0 %vm1179_vm7, %v823_v48  ;;  %2126 = vmatpush3.msk.msra.mxu1 %vm1179_vm7, %v823_v48  ;;  %s2328_s20 = smov 24  }
 0x4b9   : > { %2120 = vmatprep.subr.mxu0 %v2314_v4  ;;  %2127 = vmatprep.subr.mxu1 %v2314_v4 }
 0x4ba   : > { %2121 = vmatpush3.msra.mxu0 %v819_v33  ;;  %2128 = vmatpush3.msra.mxu1 %v819_v33 }
 0x4bb   : > { %2132 = vmatprep.subr.mxu0 %v2314_v4  ;;  %2143 = vmatprep.subr.mxu1 %v2314_v4 }
 0x4c1   : > { %v2235_v49 = vpop.eup %2234 }
 0x4c2   : > { %2123 = vmatmul.mubr.msk.f32.vlgmr.msra.gmra.mxu0 %vm1175_vm8, %v2235_v49  ;;  %v1169_v50 = vsel %vm1138_vm6, %v2235_v49, 0.0 }
 0x4c3   : > { %1170 = vadd.xlane.f32.xlu0 %v1169_v50  ;;  %2140 = vmatprep.mubr.msk.f32.mxu0 %vm2315_vm1, %v2314_v4 }
 0x4c4   : > { %2133 = vmatpush3.msra.mxu0 %v1501_v55 }
 0x4c5   : > { %v2237_v51 = vpop.eup %2236  ;;  %2134 = vmatprep.subr.mxu0 %v2314_v4 }
 0x4c6   : > { %2130 = vmatmul.mubr.msk.f32.vlgmr.msra.gmra.mxu1 %vm1175_vm8, %v2237_v51  ;;  %v1172_v53 = vsel %vm1138_vm6, %v2237_v51, 0.0  ;;  %2135 = vmatpush3.msra.mxu0 %v1500_v1 }
 0x4c7   : > { %1164 = vadd.xlane.f32.xlu0 %v1163_v52  ;;  %1173 = vadd.xlane.f32.xlu1 %v1172_v53 }
 0x4c8   : > { %2151 = vmatprep.mubr.msk.f32.mxu1 %vm2315_vm1, %v2314_v4  ;;  %2136 = vmatprep.subr.mxu0 %v2314_v4 }
 0x4c9   : > { %2137 = vmatpush3.msra.mxu0 %v1499_v2  ;;  %2144 = vmatpush3.msra.mxu1 %v1595_v29 }
 0x4ca   : > { %2138 = vmatprep.subr.mxu0 %v2314_v4  ;;  %2145 = vmatprep.subr.mxu1 %v2314_v4 }
 0x4cb   : > { %2139 = vmatpush3.msra.mxu0 %v1498_v3  ;;  %2146 = vmatpush3.msra.mxu1 %v1594_v30 }
 0x4cc   : > { %2154 = vmatprep.subr.mxu0 %v2314_v4  ;;  %2147 = vmatprep.subr.mxu1 %v2314_v4 }
 0x4e3   : > { %v1168_v54 = vpop.xlane.xlu1 %1167 }
 0x4e4   : > { %2238 = vrcp.f32 %v1168_v54 }
 0x4f1   : > { %v2239_v58 = vpop.eup %2238 }
 0x515   : > { %v1248_v56 = vpop.f32.mrf.mxu1 }
 0x517   : > { %v2110_v57 = vpop.f32.mrf.mxu1 }
 0x519   : > { %v1321_v59 = vpop.f32.mrf.mxu1 }
 0x51a   : > { %v1478_v60 = vmul.f32 %v2239_v58, %v1321_v59 }
 0x51b   : > { %v2117_v61 = vpop.f32.mrf.mxu1 }
 0x51c   : > { %1482 = vrot.lane.b32.xlu1 %v1478_v60, %s2326_s26  ;;  %s553_s26 = sand.u32 1, %s2304_s19  }
 0x51d   : > { %s1968_s2 = sshll.u32 %s553_s26, 2 }
 0x51e   : > { %s555_s25 = scalar_lea.vmem [#allocation2], %s1968_s2 }
 0x51f   : > { %s1789_s23 = sshll.u32 %s555_s25, 4  ;;  %s1790_s23 = int_to_ptr.vmem [resolvable:$true] %s1789_s23 }
 0x520   : > { %s2252_s1 = scalar_lea.vmem %s1790_s23, 64  ;;  %p2259_p0 = scmp.lt.s32.totalorder %s1790_s23, %s2257_s30 }
 0x521   : > { %p2253_p11 = scmp.ne.s32.totalorder %s1790_s23, %s2252_s1 }
 0x523   : > { %p2254_p12 = pnand %p2253_p11, %p2449_p5 }
 0x525   : > { %p2255_p13 = pneg %p2254_p12 }
 0x54c   : > { %v1171_v62 = vpop.xlane.xlu0 %1170 }
 0x54d   : > { %2240 = vrcp.f32 %v1171_v62 }
 0x550   : > { %v1174_v63 = vpop.xlane.xlu1 %1173  ;;  %v1165_v13 = vpop.xlane.xlu0 %1164 }
 0x551   : > { %2242 = vrcp.f32 %v1174_v63 }
 0x552   : > { %2244 = vrcp.f32 %v1165_v13 }
 0x55a   : > { %v2241_v5 = vpop.eup %2240 }
 0x55e   : > { %v2243_v9 = vpop.eup %2242 }
 0x55f   : > { %v2245_v14 = vpop.eup %2244 }
 0x560   : > { %v1477_v16 = vmul.f32 %v2245_v14, %v1248_v56 }
 0x582   : > { %v1396_v6 = vpop.f32.mrf.mxu0 }
 0x583   : > { %v1479_v7 = vmul.f32 %v2241_v5, %v1396_v6 }
 0x584   : > { %v2124_v8 = vpop.f32.mrf.mxu0 }
 0x585   : > { %1486 = vrot.lane.b32.xlu0 %v1479_v7, %s2327_s17  ;;  %s2744_s17 = scalar_lea.hbm %s2793_s13, %s2010_s24 }
 0x586   : > { %v1469_v10 = vpop.f32.mrf.mxu1 }
 0x587   : > { %v1480_v11 = vmul.f32 %v2243_v9, %v1469_v10 }
 0x588   : > { %v2131_v12 = vpop.f32.mrf.mxu1 }
 0x589   : > { %1490 = vrot.lane.b32.xlu1 %v1480_v11, %s2328_s20  ;;  %s1766_s20 = scalar_lea.sflag [#allocation3], %s553_s26 }
 0x58e   : > { %v1483_v15 = vpop.permute.xlu1 %1482 }
 0x58f   : > { %v1493_v19 = vsel %vm826_vm4, %v1477_v16, %v1483_v15 }
 0x5f7   : > { %v1487_v18 = vpop.permute.xlu0 %1486 }
 0x5f8   : > { %v1495_v21 = vsel %vm1494_vm9, %v1493_v19, %v1487_v18 }
 0x5fb   : > { %v1491_v22 = vpop.permute.xlu1 %1490 }
 0x5fc   : > { %v1497_v23 = vsel %vm1496_vm10, %v1495_v21, %v1491_v22 }
 0x5fd   : > { %2141 = vmatmul.mubr.msk.f32.vlgmr.msra.gmra.mxu0 %vm639_vm2, %v1497_v23 }
 0x5fe   : > { %2170 = vmatprep.mubr.msk.f32.mxu0 %vm2315_vm1, %v2314_v4  ;;  %2155 = vmatpush3.msra.mxu0 %v1688_v38 }
 0x5ff   : > { %2156 = vmatprep.subr.mxu0 %v2314_v4 }
 0x600   : > { %2157 = vmatpush3.msra.mxu0 %v1687_v39 }
 0x601   : > { %2158 = vmatprep.subr.mxu0 %v2314_v4 }
 0x602   : > { %2159 = vmatpush3.msra.mxu0 %v1686_v20 }
 0x603   : > { %2160 = vmatprep.subr.mxu0 %v2314_v4 }
 0x604   : > { %2161 = vmatpush3.msra.mxu0 %v1685_v40 }
 0x605   : > { %2162 = vmatprep.subr.mxu0 %v2314_v4 }
 0x606   : > { %2163 = vmatpush3.msra.mxu0 %v1684_v41 }
 0x607   : > { %2164 = vmatprep.subr.mxu0 %v2314_v4 }
 0x608   : > { %2165 = vmatpush3.msra.mxu0 %v1683_v42 }
 0x609   : > { %2166 = vmatprep.subr.mxu0 %v2314_v4 }
 0x60a   : > { %2167 = vmatpush3.msra.mxu0 %v1682_v43 }
 0x60b   : > { %2168 = vmatprep.subr.mxu0 %v2314_v4 }
 0x60c   : > { %2169 = vmatpush3.msra.mxu0 %v1681_v44 }
 0x6bd   : > { %v1571_v24 = vpop.f32.mrf.mxu0 }
 0x6be   : > { %v2682_v25 = vadd.f32 %v1571_v24, %v2470_v0  ;;  %v1593_v0 = vld [vmem:[%s2791_s11 + $0x8] sm:$0xff] }
 0x6bf   : > { %v2142_v26 = vpop.f32.mrf.mxu0  ;;  %2148 = vmatpush3.msra.mxu1 %v1593_v0 }
 0x6c0   : > { %v1576_v27 = vmul.f32 %v2682_v25, %v2682_v25  ;;  %2149 = vmatprep.subr.mxu1 %v2314_v4 }
 0x6c1   : > { %2150 = vmatpush3.msra.mxu1 %v1592_v31 }
 0x6c2   : > { %v1577_v28 = vsel %vm611_vm0, %v1576_v27, 0.0 }
 0x6c3   : > { %1578 = vadd.xlane.f32.xlu1 %v1577_v28 }
 0x74c   : > { %v1579_v32 = vpop.xlane.xlu1 %1578 }
 0x74d   : > { %v1580_v33 = vmul.f32 0.03125, %v1579_v32 }
 0x74f   : > { %v1581_v17 = vadd.f32 1e-06, %v1580_v33 }
 0x751   : > { %2246 = vrsqrt.f32 %v1581_v17 }
 0x75e   : > { %v2247_v34 = vpop.eup %2246 }
 0x75f   : > { %v1583_v36 = vmul.f32 %v2247_v34, %v2682_v25 }
 0x761   : > { %v1591_v37 = vmul.f32 %v2005_v35, %v1583_v36 }
 0x763   : > { %2152 = vmatmul.mubr.msk.f32.vlgmr.msra.gmra.mxu1 %vm639_vm2, %v1591_v37 }
 0x823   : > { %v1665_v45 = vpop.f32.mrf.mxu1 }
 0x824   : > { %1677 = vrot.lane.b32.xlu0 %v1665_v45, %s2329_s0  ;;  %v2007_v47 = vmul.f32 -1.442695, %v1665_v45  ;;  %s2258_s0 = scalar_lea.vmem %s2257_s30, 128 }
 0x825   : > { %v2153_v46 = vpop.f32.mrf.mxu1  ;;  %p2260_p1 = scmp.lt.s32.totalorder %s2258_s0, %s2252_s1 }
 0x826   : > { %2248 = vpow2.f32 %v2007_v47 }
 0x827   : > { %p2261_p2 = por %p2260_p1, %p2259_p0 }
 0x829   : > { %p2262_p3 = pnand %p2261_p2, %p2255_p13 }
 0x833   : > { %v2249_v48 = vpop.eup %2248 }
 0x834   : > { %v1672_v49 = vadd.f32 1.0, %v2249_v48 }
 0x836   : > { %2250 = vrcp.f32 %v1672_v49 }
 0x843   : > { %v2251_v50 = vpop.eup %2250 }
 0x844   : > { %v1675_v51 = vmul.f32 %v2251_v50, %v1665_v45 }
 0x896   : > { %v1678_v52 = vpop.permute.xlu0 %1677 }
 0x897   : > { %v1680_v4 = vmul.f32 %v1678_v52, %v1675_v51 }
 0x899   : > { %2171 = vmatmul.mubr.msk.f32.vlgmr.msra.gmra.mxu0 %vm1689_vm11, %v1680_v4 }
 0x959   : > { %v1759_v53 = vpop.f32.mrf.mxu0 }
 0x95a   : > { %v1763_v54 = vadd.f32 %v1759_v53, %v2682_v25 }
 0x95b   : > { %v2172_v55 = vpop.f32.mrf.mxu0 }
 0x95c   : > { %1764 = vst.msk [vmem:[%s555_s25] sm:$0xf] %vm611_vm0, %v1763_v54 }
 0x95d   : > { %2265 = shalt.err (!%p2262_p3)
}
 0x95e   : > { %s2266_s2 = scalar_lea.hbm %s2744_s17, 64  ;;  %s2270_s25 = scalar_lea.hbm %s2793_s13, 128 }
 0x95f   : > { %p2267_p4 = scmp.ne.s32.totalorder %s2744_s17, %s2266_s2  ;;  %p2271_p9 = scmp.lt.s32.totalorder %s2744_s17, %s2793_s13 }
 0x960   : > { %p2272_p10 = scmp.lt.s32.totalorder %s2270_s25, %s2266_s2 }
 0x961   : > { %p2268_p7 = pnand %p2267_p4, %p2449_p5 }
 0x962   : > { %p2273_p11 = por %p2272_p10, %p2271_p9 }
 0x963   : > { %p2269_p8 = pneg %p2268_p7 }
 0x965   : > { %p2274_p12 = pnand %p2273_p11, %p2269_p8 }
 0x967   : > { %2277 = shalt.err (!%p2274_p12)
}
 0x968   : > { %2173 = dma.vmem_to_hbm [thread:$0]  (%p2449_p5), %s1790_s23, 64, %s2744_s17, %s1766_s20  }
 0x969 PF: > { %p2179_p13 = scmp.ge.s32.totalorder %s2312_s21, 2  ;;  %s1807_s1 = sand.u32 1, %s2300_s18  }
 0x96a   : > { %s1808_s22 = scalar_lea.sflag [#allocation3], %s1807_s1 }
 0x96b   : > { %p2176_p0 = pnand %p2179_p13, %p2453_p6 }
 0x96d   : > { %p2177_p1 = pneg %p2176_p0 }
 0x96f   : > { %2295 = dma.done.wait (%p2177_p1), %s1808_s22, 64  }
 0x970   : > { %2297 = vsyncadd (%p2177_p1), %s1808_s22, 4294967232  ;;  %s2810_s21 = sld [smem:[#allocation6_spill]]  ;;  %s2813_s18 = smov %s2304_s19 }
 0x971   : > { %s2811_s30 = sld [smem:[#allocation5_spill]] }
 0x972   : > { %s2812_s20 = sld [smem:[#allocation7_spill]] }
 0x976   : > { %p26_p2 = scmp.ge.s32.totalorder %s2810_s21, 4  }
 0x977   : > { %s2814_s19 = smov %s2811_s30 }
 0x978   :  { %28 = sbr.rel (!%p26_p2) target bundleno = 7 (0x7), region = 146 }
 0x97d   :  { %1829 = vsyncpa [#allocation3], 1 }
 0x97e   :  { %1831 = vsyncpa [#allocation3 + $0x1], 1 }

</bundles_post_ra>
